<compile_context>
chip_gen: v7x
topology: tpu7x:2x2x1
jax: 0.10.0
libtpu: 0.0.40
codegen_flags: <defaults>
</compile_context>

<pallas_src>
import functools

import jax
import jax.numpy as jnp
from jax.experimental import pallas as pl
from jax.experimental.pallas import tpu as pltpu


# ----------------------------------------------------------------------------
# Pallas kernel: conv-as-matmul with lane-dense [Cout, B*H*W] output
# ----------------------------------------------------------------------------
def conv_matmul(wmat, cols, *, act=None, out_dtype=jnp.float32):
    """wmat: [Cout, K*K*Cin], cols: [K*K*Cin, B*H*W]  ->  [Cout, B*H*W].

    Both operands are bf16, accumulation is f32 on the MXU.  The output's last
    dim is B*H*W (a multiple of 128 here), so stores are unmasked / lane-dense.
    """
    M, Kd = wmat.shape
    Kd2, N = cols.shape
    assert Kd == Kd2

    # Tile the lane-dense N axis: >=2 blocks (keeps both v7x TensorCores busy)
    # while each block stays a multiple of 128 lanes.
    tn = N
    for cand in (256, 128):
        if N % cand == 0 and N // cand >= 2:
            tn = cand
            break

    def kernel(w_ref, x_ref, o_ref):
        acc = jnp.dot(w_ref[...], x_ref[...], preferred_element_type=jnp.float32)
        if act == "leaky_relu":                    # nn.LeakyReLU() default slope 0.01
            acc = jnp.where(acc > 0.0, acc, 0.01 * acc)
        o_ref[...] = acc.astype(o_ref.dtype)

    return pl.pallas_call(
        kernel,
        out_shape=jax.ShapeDtypeStruct((M, N), out_dtype),
        grid=(N // tn,),
        in_specs=[pl.BlockSpec((M, Kd), lambda j: (0, 0)),
                  pl.BlockSpec((Kd, tn), lambda j: (0, j))],
        out_specs=pl.BlockSpec((M, tn), lambda j: (0, j)),
        compiler_params=pltpu.CompilerParams(dimension_semantics=("parallel",)),
    )(wmat, cols)


# ----------------------------------------------------------------------------
# Layout plumbing (XLA side): im2col views with (ki, kj, ci)-major rows and a
# lane-dense (b, h, w)-major column axis, matching weight flattening below.
# ----------------------------------------------------------------------------
def _im2col(x_nchw, ksize, padding):
    """x: [B, C, H, W] -> cols: [K*K*C, B*H*W] (stride-1, zero padding)."""
    B, C, H, W = x_nchw.shape
    xp = jnp.pad(x_nchw, ((0, 0), (0, 0), (padding, padding), (padding, padding)))
    taps = []
    for ki in range(ksize):
        for kj in range(ksize):
            patch = xp[:, :, ki:ki + H, kj:kj + W]                  # (B, C, H, W)
            taps.append(jnp.transpose(patch, (1, 0, 2, 3)).reshape(C, B * H * W))
    return jnp.concatenate(taps, axis=0)                             # (K*K*C, B*H*W)


def _wmat(w):
    """[Cout, Cin, K, K] -> [Cout, K*K*Cin], row order (ki, kj, ci) to match _im2col."""
    cout, cin, k, _ = w.shape
    return jnp.transpose(w, (0, 2, 3, 1)).reshape(cout, k * k * cin)


def _rows_to_nchw(rows, B, H, W):
    """[C, B*H*W] -> [B, C, H, W]."""
    C = rows.shape[0]
    return jnp.transpose(rows.reshape(C, B, H, W), (1, 0, 2, 3))


# ----------------------------------------------------------------------------
# AffineParamBlock forward
# ----------------------------------------------------------------------------
def affine_param_block_forward(x, params, *, ksize=7, clamp=2.0, forward_mode=True):
    """Returns ((scale, bias), dlogdet), each [B, out_ch//2, H, W].

    `forward_mode` is part of the reference signature but unused by its forward.
    """
    del forward_mode
    B, Cin, H, W = x.shape
    pad = ksize // 2
    w1, w2, running_mean = params["w1"], params["w2"], params["running_mean"]
    hidden = w1.shape[0]
    out_ch = w2.shape[0]
    half = out_ch // 2

    # conv1 + LeakyReLU (fused epilogue), bf16 operands, lane-dense bf16 output.
    cols1 = _im2col(x.astype(jnp.bfloat16), ksize, pad)
    h_rows = conv_matmul(_wmat(w1).astype(jnp.bfloat16), cols1,
                         act="leaky_relu", out_dtype=jnp.bfloat16)   # [hidden, B*H*W]

    # conv2 (zero-padded, stride 1), lane-dense f32 output.
    h_nchw = _rows_to_nchw(h_rows, B, H, W)                           # [B, hidden, H, W]
    cols2 = _im2col(h_nchw, ksize, pad)
    out_rows = conv_matmul(_wmat(w2).astype(jnp.bfloat16), cols2,
                           act=None, out_dtype=jnp.float32)           # [out_ch, B*H*W]

    # chunk(2, dim=1) == row split in the [Cout, B*H*W] layout.
    dl_raw_rows = out_rows[:half]
    bias_rows = out_rows[half:]

    # Soft clamp + VolumeNorm(eval: subtract running_mean buffer) + exp.
    # Tiny elementwise tail on lane-dense rows; XLA fuses it into one pass.
    dlogdet_rows = clamp * 0.636 * jnp.arctan(dl_raw_rows / clamp) - running_mean.reshape(())
    scale_rows = jnp.exp(dlogdet_rows)

    scale = _rows_to_nchw(scale_rows, B, H, W)
    bias = _rows_to_nchw(bias_rows, B, H, W)
    dlogdet = _rows_to_nchw(dlogdet_rows, B, H, W)
    return (scale, bias), dlogdet


# ----------------------------------------------------------------------------
# Pure-XLA reference (f32) for a numerical self-check
# ----------------------------------------------------------------------------
def reference_forward(x, params, *, ksize=7, clamp=2.0):
    pad = ksize // 2
    dn = ("NCHW", "OIHW", "NCHW")
    h = jax.lax.conv_general_dilated(x, params["w1"], (1, 1),
                                     [(pad, pad), (pad, pad)], dimension_numbers=dn)
    h = jnp.where(h > 0.0, h, 0.01 * h)
    out = jax.lax.conv_general_dilated(h, params["w2"], (1, 1),
                                       [(pad, pad), (pad, pad)], dimension_numbers=dn)
    half = out.shape[1] // 2
    dl_raw, bias = out[:, :half], out[:, half:]
    dlogdet = clamp * 0.636 * jnp.arctan(dl_raw / clamp) - params["running_mean"]
    return (jnp.exp(dlogdet), bias), dlogdet


# ----------------------------------------------------------------------------
if __name__ == "__main__":
    B, in_ch, H, W = 2, 4, 16, 16
    ksize, clamp = 7, 2.0
    out_ch = 2 * in_ch          # AffineParamBlock default
    hidden_ch = out_ch

    key = jax.random.PRNGKey(0)
    kx, k1, k2 = jax.random.split(key, 3)
    x = jax.random.normal(kx, (B, in_ch, H, W), jnp.float32)

    # conv1: PyTorch Conv2d default (kaiming-uniform-like) bound = 1/sqrt(fan_in).
    b1 = float((in_ch * ksize * ksize) ** -0.5)
    b2 = float((hidden_ch * ksize * ksize) ** -0.5)
    params = {
        "w1": jax.random.uniform(k1, (hidden_ch, in_ch, ksize, ksize),
                                 jnp.float32, -b1, b1),
        # NOTE: the reference zero-inits conv[-1]; small random weights are used
        # here so the synthetic forward (and the numerical check) is non-degenerate.
        "w2": jax.random.uniform(k2, (out_ch, hidden_ch, ksize, ksize),
                                 jnp.float32, -b2, b2),
        # VolumeNorm running_mean buffer (eval mode -> plain subtraction).
        "running_mean": jnp.zeros((1, 1, 1, 1), jnp.float32),
    }

    fwd = jax.jit(functools.partial(affine_param_block_forward, ksize=ksize, clamp=clamp))
    (scale, bias), dlogdet = fwd(x, params)
    jax.block_until_ready((scale, bias, dlogdet))

    assert scale.shape == (B, in_ch, H, W)
    assert bias.shape == (B, in_ch, H, W)
    assert dlogdet.shape == (B, in_ch, H, W)

    # Numerical self-check against the pure-XLA f32 reference (tolerances sized
    # for bf16 operands with f32 accumulation).
    (scale_r, bias_r), dlogdet_r = reference_forward(x, params, ksize=ksize, clamp=clamp)
    for got, ref in ((scale, scale_r), (bias, bias_r), (dlogdet, dlogdet_r)):
        assert jnp.allclose(got, ref, atol=5e-2, rtol=5e-2), \
            float(jnp.max(jnp.abs(got - ref)))

    print("KERNEL_OK")
</pallas_src>

<mosaic_0001>
module attributes {stable_mosaic.version = 11 : i64} {
  func.func @kernel(%arg0: i32, %arg1: memref<8x196xbf16, #tpu.memory_space<vmem>>, %arg2: memref<196x256xbf16, #tpu.memory_space<vmem>>, %arg3: memref<8x256xbf16, #tpu.memory_space<vmem>>) attributes {dimension_semantics = [#tpu.dimension_semantics<parallel>], iteration_bounds = array<i64: 2>, scalar_prefetch = 0 : i64, scratch_operands = 0 : i64, tpu.core_type = #tpu.core_type<tc>, window_params = [{pipeline_mode = #tpu.pipeline_mode<synchronous>, transform_indices = @transform_0, window_bounds = array<i64: 8, 196>}, {transform_indices = @transform_1, window_bounds = array<i64: 196, 256>}, {transform_indices = @transform_2, window_bounds = array<i64: 8, 256>}]} {
    %c0 = arith.constant 0 : index
    %c0_0 = arith.constant 0 : index
    %0 = vector.load %arg1[%c0, %c0_0] : memref<8x196xbf16, #tpu.memory_space<vmem>>, vector<8x196xbf16>
    %c0_1 = arith.constant 0 : index
    %c0_2 = arith.constant 0 : index
    %1 = vector.load %arg2[%c0_1, %c0_2] : memref<196x256xbf16, #tpu.memory_space<vmem>>, vector<196x256xbf16>
    %cst = arith.constant dense<0.000000e+00> : vector<8x256xf32>
    %2 = tpu.matmul %0, %1, %cst {dimension_numbers = #tpu.dot_dimension_numbers<[1], [0], [0], [1], [0, 0, 1, 1], [], []>} : vector<8x196xbf16>, vector<196x256xbf16>, vector<8x256xf32> -> vector<8x256xf32>
    %cst_3 = arith.constant 0.000000e+00 : f32
    %3 = vector.broadcast %cst_3 : f32 to vector<8x256xf32>
    %4 = arith.cmpf ogt, %2, %3 : vector<8x256xf32>
    %cst_4 = arith.constant 0.00999999977 : f32
    %5 = vector.broadcast %cst_4 : f32 to vector<8x256xf32>
    %6 = arith.mulf %5, %2 : vector<8x256xf32>
    %7 = arith.select %4, %2, %6 : vector<8x256xi1>, vector<8x256xf32>
    %8 = arith.truncf %7 : vector<8x256xf32> to vector<8x256xbf16>
    %c0_5 = arith.constant 0 : index
    %c0_6 = arith.constant 0 : index
    %9 = vector.load %arg3[%c0_5, %c0_6] : memref<8x256xbf16, #tpu.memory_space<vmem>>, vector<8x256xbf16>
    tpu.vector_store %arg3[%c0_5, %c0_6], %8 {strides = array<i32>} : memref<8x256xbf16, #tpu.memory_space<vmem>>, vector<8x256xbf16>,
    return
  }
  func.func @transform_0(%arg0: i32) -> (i32, i32) {
    %c0_i32 = arith.constant 0 : i32
    %c0_i32_0 = arith.constant 0 : i32
    %c0_i32_1 = arith.constant 0 : i32
    return %c0_i32, %c0_i32_0 : i32, i32
  }
  func.func @transform_1(%arg0: i32) -> (i32, i32) {
    %c0_i32 = arith.constant 0 : i32
    %c0_i32_0 = arith.constant 0 : i32
    return %c0_i32, %arg0 : i32, i32
  }
  func.func @transform_2(%arg0: i32) -> (i32, i32) {
    %c0_i32 = arith.constant 0 : i32
    %c0_i32_0 = arith.constant 0 : i32
    return %c0_i32, %arg0 : i32, i32
  }
}

module attributes {stable_mosaic.version = 11 : i64} {
  func.func @kernel(%arg0: i32, %arg1: memref<8x392xbf16, #tpu.memory_space<vmem>>, %arg2: memref<392x256xbf16, #tpu.memory_space<vmem>>, %arg3: memref<8x256xf32, #tpu.memory_space<vmem>>) attributes {dimension_semantics = [#tpu.dimension_semantics<parallel>], iteration_bounds = array<i64: 2>, scalar_prefetch = 0 : i64, scratch_operands = 0 : i64, tpu.core_type = #tpu.core_type<tc>, window_params = [{pipeline_mode = #tpu.pipeline_mode<synchronous>, transform_indices = @transform_0, window_bounds = array<i64: 8, 392>}, {transform_indices = @transform_1, window_bounds = array<i64: 392, 256>}, {transform_indices = @transform_2, window_bounds = array<i64: 8, 256>}]} {
    %c0 = arith.constant 0 : index
    %c0_0 = arith.constant 0 : index
    %0 = vector.load %arg1[%c0, %c0_0] : memref<8x392xbf16, #tpu.memory_space<vmem>>, vector<8x392xbf16>
    %c0_1 = arith.constant 0 : index
    %c0_2 = arith.constant 0 : index
    %1 = vector.load %arg2[%c0_1, %c0_2] : memref<392x256xbf16, #tpu.memory_space<vmem>>, vector<392x256xbf16>
    %cst = arith.constant dense<0.000000e+00> : vector<8x256xf32>
    %2 = tpu.matmul %0, %1, %cst {dimension_numbers = #tpu.dot_dimension_numbers<[1], [0], [0], [1], [0, 0, 1, 1], [], []>} : vector<8x392xbf16>, vector<392x256xbf16>, vector<8x256xf32> -> vector<8x256xf32>
    %c0_3 = arith.constant 0 : index
    %c0_4 = arith.constant 0 : index
    %3 = vector.load %arg3[%c0_3, %c0_4] : memref<8x256xf32, #tpu.memory_space<vmem>>, vector<8x256xf32>
    tpu.vector_store %arg3[%c0_3, %c0_4], %2 {strides = array<i32>} : memref<8x256xf32, #tpu.memory_space<vmem>>, vector<8x256xf32>,
    return
  }
  func.func @transform_0(%arg0: i32) -> (i32, i32) {
    %c0_i32 = arith.constant 0 : i32
    %c0_i32_0 = arith.constant 0 : i32
    %c0_i32_1 = arith.constant 0 : i32
    return %c0_i32, %c0_i32_0 : i32, i32
  }
  func.func @transform_1(%arg0: i32) -> (i32, i32) {
    %c0_i32 = arith.constant 0 : i32
    %c0_i32_0 = arith.constant 0 : i32
    return %c0_i32, %arg0 : i32, i32
  }
  func.func @transform_2(%arg0: i32) -> (i32, i32) {
    %c0_i32 = arith.constant 0 : i32
    %c0_i32_0 = arith.constant 0 : i32
    return %c0_i32, %arg0 : i32, i32
  }
}

</mosaic_0001>

<bundles_post_ra>
// kernel: affine_param_block_forward.2
= control target key start
LH: loop header
LB: loop body
LE: loop exit
PB: predicated region body
PF: predicated region fallthrough
CT: control target
= control target key end

     0   :  { %s713_s9 = smov 0   ;;  %s715_s10 = smov 0   ;;  %s849_s0 = inlined_call_operand.vmem [shape: bf16[8,196], index: 0, kind: input, shape index: {}]   ;;  %s850_s1 = inlined_call_operand.vmem [shape: bf16[196,512], index: 1, kind: input, shape index: {}]   ;;  %s851_s2 = inlined_call_operand.vmem [shape: bf16[8,512], index: 2, kind: output, shape index: {}]  }
   0x1   :  { %s717_s11 = smov 0  }
   0x2 LB: > { %s564_s12 = sadd.s32 4294967295, %s696_s11   ;;  %s730_s13 = sadd.s32 1, %s696_s11   ;;  %s696_s11 = sphi %s717_s11, %s854_s11   ;;  %s692_s10 = sphi %s715_s10, %s853_s10   ;;  %s688_s9 = sphi %s713_s9, %s852_s9  }
   0x3   : > { %s37_s14 = ssub.s32 %s696_s11, %s730_s13  ;;  %s40_s15 = sadd.s32 1, %s692_s10 }
   0x4   : > { %p38_p0 = scmp.eq.s32.totalorder %s37_s14, 0  ;;  %p47_p1 = scmp.ne.s32.totalorder %s692_s10, %s688_s9 }
   0x5   : > { %p48_p2 = scmp.eq.s32.totalorder %s696_s11, 0  ;;  %p567_p4 = scmp.ge.s32.totalorder %s696_s11, 2 }
   0x6   : > { %s739_s16 = scalar_select %p38_p0, %s692_s10, %s40_s15  }
   0x7   : > { %p49_p3 = por %p48_p2, %p47_p1  ;;  %102 = sbr.rel (%p567_p4) target bundleno = 31 (0x1f), region = 20 }
   0xe   : > { %105 = sbr.rel (!%p49_p3) target bundleno = 31 (0x1f), region = 24  ;;  %s107_s17 = sand.u32 (%p49_p3), 1, %s692_s10  }
   0xf   : > { %s606_s18 = sshll.u32 (%p49_p3), %s696_s11, 3  ;;  %s608_s19 = smul.u32 (%p49_p3), 200, %s107_s17 }
  0x10   : > { %s747_s22 = scalar_lea.vmem (%p49_p3), %s850_s1, %s606_s18 }
  0x11   : > { %v188_v0 = vld [vmem:[%s747_s22] sm:$0xff] (%p49_p3)  ;;  %v190_v1 = vld [vmem:[%s747_s22 + $0x10] sm:$0xff] (%p49_p3)  ;;  %s755_s23 = scalar_lea.vmem (%p49_p3), [#allocation2], %s608_s19 }
  0x12   : > { %v192_v2 = vld [vmem:[%s747_s22 + $0x20] sm:$0xff] (%p49_p3)  ;;  %v194_v3 = vld [vmem:[%s747_s22 + $0x30] sm:$0xff] (%p49_p3)  ;;  %189 = vst [vmem:[%s755_s23] sm:$0xff] (%p49_p3), %v188_v0  ;;  %191 = vst [vmem:[%s755_s23 + $0x8] sm:$0xff] (%p49_p3), %v190_v1 }
  0x13   : > { %v196_v4 = vld [vmem:[%s747_s22 + $0x40] sm:$0xff] (%p49_p3)  ;;  %v198_v5 = vld [vmem:[%s747_s22 + $0x50] sm:$0xff] (%p49_p3)  ;;  %193 = vst [vmem:[%s755_s23 + $0x10] sm:$0xff] (%p49_p3), %v192_v2  ;;  %195 = vst [vmem:[%s755_s23 + $0x18] sm:$0xff] (%p49_p3), %v194_v3 }
  0x14   : > { %197 = vst [vmem:[%s755_s23 + $0x20] sm:$0xff] (%p49_p3), %v196_v4  ;;  %199 = vst [vmem:[%s755_s23 + $0x28] sm:$0xff] (%p49_p3), %v198_v5  ;;  %v200_v6 = vld [vmem:[%s747_s22 + $0x60] sm:$0xff] (%p49_p3)  ;;  %v202_v7 = vld [vmem:[%s747_s22 + $0x70] sm:$0xff] (%p49_p3) }
  0x15   : > { %v204_v8 = vld [vmem:[%s747_s22 + $0x80] sm:$0xff]  ;;  %201 = vst [vmem:[%s755_s23 + $0x30] sm:$0xff] %v200_v6  ;;  %203 = vst [vmem:[%s755_s23 + $0x38] sm:$0xff] %v202_v7  ;;  %v206_v9 = vld [vmem:[%s747_s22 + $0x90] sm:$0xff] }
  0x16   : > { %205 = vst [vmem:[%s755_s23 + $0x40] sm:$0xff] %v204_v8  ;;  %v208_v10 = vld [vmem:[%s747_s22 + $0xa0] sm:$0xff]  ;;  %v210_v11 = vld [vmem:[%s747_s22 + $0xb0] sm:$0xff]  ;;  %207 = vst [vmem:[%s755_s23 + $0x48] sm:$0xff] %v206_v9 }
  0x17   : > { %209 = vst [vmem:[%s755_s23 + $0x50] sm:$0xff] %v208_v10  ;;  %211 = vst [vmem:[%s755_s23 + $0x58] sm:$0xff] %v210_v11  ;;  %v212_v12 = vld [vmem:[%s747_s22 + $0xc0] sm:$0xff]  ;;  %v214_v13 = vld [vmem:[%s747_s22 + $0xd0] sm:$0xff] }
  0x18   : > { %v216_v14 = vld [vmem:[%s747_s22 + $0xe0] sm:$0xff]  ;;  %213 = vst [vmem:[%s755_s23 + $0x60] sm:$0xff] %v212_v12  ;;  %215 = vst [vmem:[%s755_s23 + $0x68] sm:$0xff] %v214_v13  ;;  %v218_v15 = vld [vmem:[%s747_s22 + $0xf0] sm:$0xff] }
  0x19   : > { %217 = vst [vmem:[%s755_s23 + $0x70] sm:$0xff] %v216_v14  ;;  %v220_v16 = vld [vmem:[%s747_s22 + $0x100] sm:$0xff]  ;;  %v222_v17 = vld [vmem:[%s747_s22 + $0x110] sm:$0xff]  ;;  %219 = vst [vmem:[%s755_s23 + $0x78] sm:$0xff] %v218_v15 }
  0x1a   : > { %221 = vst [vmem:[%s755_s23 + $0x80] sm:$0xff] %v220_v16  ;;  %223 = vst [vmem:[%s755_s23 + $0x88] sm:$0xff] %v222_v17  ;;  %v224_v18 = vld [vmem:[%s747_s22 + $0x120] sm:$0xff]  ;;  %v226_v19 = vld [vmem:[%s747_s22 + $0x130] sm:$0xff] }
  0x1b   : > { %v228_v20 = vld [vmem:[%s747_s22 + $0x140] sm:$0xff]  ;;  %225 = vst [vmem:[%s755_s23 + $0x90] sm:$0xff] %v224_v18  ;;  %227 = vst [vmem:[%s755_s23 + $0x98] sm:$0xff] %v226_v19  ;;  %v230_v21 = vld [vmem:[%s747_s22 + $0x150] sm:$0xff] }
  0x1c   : > { %229 = vst [vmem:[%s755_s23 + $0xa0] sm:$0xff] %v228_v20  ;;  %v232_v22 = vld [vmem:[%s747_s22 + $0x160] sm:$0xff]  ;;  %v234_v23 = vld [vmem:[%s747_s22 + $0x170] sm:$0xff]  ;;  %231 = vst [vmem:[%s755_s23 + $0xa8] sm:$0xff] %v230_v21 }
  0x1d   : > { %233 = vst [vmem:[%s755_s23 + $0xb0] sm:$0xff] %v232_v22  ;;  %235 = vst [vmem:[%s755_s23 + $0xb8] sm:$0xff] %v234_v23  ;;  %v236_v24 = vld [vmem:[%s747_s22 + $0x180] sm:$0xff] }
  0x1e   : > { %237 = vst [vmem:[%s755_s23 + $0xc0] sm:$0xff] %v236_v24 }
  0x1f PF: > { %p570_p5 = scmp.ge.s32.totalorder %s696_s11, 1  ;;  %p242_p6 = scmp.lt.s32.totalorder %s696_s11, 3 }
  0x21   : > { %p243_p7 = pnand %p570_p5, %p242_p6 }
  0x22   : > { %s249_s24 = sand.u32 (!%p243_p7), 1, %s688_s9   ;;  %v278_v25 = vld [vmem:[%s849_s0] sm:$0xff] (!%p243_p7)  ;;  %vm435_vm0 = vcmask (!%p243_p7), 556032   ;;  %vm439_vm1 = vcmask (!%p243_p7), 1041408   ;;  %s571_s29 = sshll.u32 (!%p243_p7), %s564_s12, 1 }
  0x23   : > { %246 = sbr.rel (%p243_p7) target bundleno = 311 (0x137), region = 62  ;;  %v574_v26 = vcombine.high (!%p243_p7), %v278_v25, %v278_v25  ;;  %v573_v55 = vcombine.low (!%p243_p7), %v278_v25, %v278_v25  ;;  %p272_p8 = scmp.lt.s32.totalorder (!%p243_p7), %s571_s29, 3 }
  0x24   : > { %s609_s27 = smul.u32 (!%p243_p7), 200, %s249_s24 }
  0x25   : > { %602 = vmatprep.mubr.msk.bf16.mxu0 (!%p243_p7), %vm435_vm0, %v574_v26 }
  0x26   : > { %s807_s28 = scalar_lea.vmem (!%p243_p7), [#allocation2], %s609_s27 }
  0x27   : > { %v634_v27 = vld [vmem:[%s807_s28 + $0x4] ss:$8 sps:$4 sm:$0xff] (!%p243_p7)   ;;  %v636_v28 = vld [vmem:[%s807_s28] ss:$8 sps:$4 sm:$0xff] (!%p243_p7)   ;;  %v637_v29 = vld [vmem:[%s807_s28 + $0x14] ss:$8 sps:$4 sm:$0xff] (!%p243_p7)  }
  0x28   : > { %446 = vmatprep.subr.bf16.mxu0 (!%p243_p7), %v634_v27  ;;  %v639_v30 = vld [vmem:[%s807_s28 + $0x10] ss:$8 sps:$4 sm:$0xff] (!%p243_p7)   ;;  %v640_v31 = vld [vmem:[%s807_s28 + $0x24] ss:$8 sps:$4 sm:$0xff] (!%p243_p7)   ;;  %v642_v32 = vld [vmem:[%s807_s28 + $0x20] ss:$8 sps:$4 sm:$0xff] (!%p243_p7)  }
  0x29   : > { %447 = vmatpush1.bf16.msra.mxu0 (!%p243_p7), %v636_v28  ;;  %v643_v33 = vld [vmem:[%s807_s28 + $0x34] ss:$8 sps:$4 sm:$0xff] (!%p243_p7)   ;;  %v645_v34 = vld [vmem:[%s807_s28 + $0x30] ss:$8 sps:$4 sm:$0xff] (!%p243_p7)   ;;  %v646_v35 = vld [vmem:[%s807_s28 + $0x44] ss:$8 sps:$4 sm:$0xff] (!%p243_p7)  }
  0x2a   : > { %448 = vmatprep.subr.bf16.mxu0 %v637_v29  ;;  %v648_v36 = vld [vmem:[%s807_s28 + $0x40] ss:$8 sps:$4 sm:$0xff]   ;;  %v649_v37 = vld [vmem:[%s807_s28 + $0x54] ss:$8 sps:$4 sm:$0xff]   ;;  %v651_v38 = vld [vmem:[%s807_s28 + $0x50] ss:$8 sps:$4 sm:$0xff]  }
  0x2b   : > { %v652_v39 = vld [vmem:[%s807_s28 + $0x64] ss:$8 sps:$4 sm:$0xff]   ;;  %v654_v40 = vld [vmem:[%s807_s28 + $0x60] ss:$8 sps:$4 sm:$0xff]   ;;  %v655_v41 = vld [vmem:[%s807_s28 + $0x74] ss:$8 sps:$4 sm:$0xff]  }
  0x2c   : > { %v657_v42 = vld [vmem:[%s807_s28 + $0x70] ss:$8 sps:$4 sm:$0xff]   ;;  %v658_v43 = vld [vmem:[%s807_s28 + $0x84] ss:$8 sps:$4 sm:$0xff]   ;;  %v660_v44 = vld [vmem:[%s807_s28 + $0x80] ss:$8 sps:$4 sm:$0xff]  }
  0x2d   : > { %449 = vmatpush1.bf16.msra.mxu0 %v639_v30  ;;  %v661_v45 = vld [vmem:[%s807_s28 + $0x94] ss:$8 sps:$4 sm:$0xff]   ;;  %v663_v46 = vld [vmem:[%s807_s28 + $0x90] ss:$8 sps:$4 sm:$0xff]   ;;  %v664_v47 = vld [vmem:[%s807_s28 + $0xa4] ss:$8 sps:$4 sm:$0xff]  }
  0x2e   : > { %450 = vmatprep.subr.bf16.mxu0 %v640_v31  ;;  %v666_v48 = vld [vmem:[%s807_s28 + $0xa0] ss:$8 sps:$4 sm:$0xff]   ;;  %v667_v49 = vld [vmem:[%s807_s28 + $0xb4] ss:$8 sps:$4 sm:$0xff]   ;;  %v669_v51 = vld [vmem:[%s807_s28 + $0xb0] ss:$8 sps:$4 sm:$0xff]  }
  0x2f   : > { %v303_v50 = vld [vmem:[%s807_s28 + $0xc0] sm:$0x33]  ;;  %s856_s29 = smov (!%p272_p8, %s571_s29), 3 }
  0x30   : > { %v600_v52 = vcombine.high %v303_v50, %v303_v50  ;;  %v599_v53 = vcombine.low %v303_v50, %v303_v50  ;;  %s572_s30 = sshll.u32 %s856_s29, 2 }
  0x31   : > { %451 = vmatpush1.bf16.msra.mxu0 %v642_v32  ;;  %s275_s5 = scalar_lea.vmem %s851_s2, %s572_s30 }
  0x32   : > { %452 = vmatprep.subr.bf16.mxu0 %v643_v33  ;;  %v441_v54 = vsel %vm439_vm1, %v599_v53, 0 }
  0x35   : > { %453 = vmatpush1.bf16.msra.mxu0 %v645_v34 }
  0x36   : > { %454 = vmatprep.subr.bf16.mxu0 %v646_v35 }
  0x39   : > { %455 = vmatpush1.bf16.msra.mxu0 %v648_v36 }
  0x3a   : > { %456 = vmatprep.subr.bf16.mxu0 %v649_v37 }
  0x3d   : > { %457 = vmatpush1.bf16.msra.mxu0 %v651_v38 }
  0x3e   : > { %458 = vmatprep.subr.bf16.mxu0 %v652_v39 }
  0x41   : > { %459 = vmatpush1.bf16.msra.mxu0 %v654_v40 }
  0x42   : > { %460 = vmatprep.subr.bf16.mxu0 %v655_v41 }
  0x45   : > { %461 = vmatpush1.bf16.msra.mxu0 %v657_v42 }
  0x46   : > { %462 = vmatprep.subr.bf16.mxu0 %v658_v43 }
  0x49   : > { %463 = vmatpush1.bf16.msra.mxu0 %v660_v44 }
  0x4a   : > { %464 = vmatprep.subr.bf16.mxu0 %v661_v45 }
  0x4d   : > { %465 = vmatpush1.bf16.msra.mxu0 %v663_v46 }
  0x4e   : > { %466 = vmatprep.subr.bf16.mxu0 %v664_v47 }
  0x51   : > { %467 = vmatpush1.bf16.msra.mxu0 %v666_v48 }
  0x52   : > { %468 = vmatprep.subr.bf16.mxu0 %v667_v49 }
  0x55   : > { %469 = vmatpush1.bf16.msra.mxu0 %v669_v51 }
  0x56   : > { %601 = vmatprep.subr.msk.bf16.mxu0 %vm439_vm1, %v600_v52 }
  0x59   : > { %471 = vmatpush1.bf16.msra.mxu0 %v441_v54 }
  0x5c   : > { %479 = vmatmul.mubr.bf16.vlgmr.msra.gmra.mrb[0].mxu0 %v573_v55 }
 0x12f   : > { %v480_v56 = vpop.f32.mrb[0].mxu0 }
 0x130   : > { %vm487_vm2 = vcmp.gt.f32.partialorder %v480_v56, 0.0  ;;  %v489_v57 = vmul.f32 0.01, %v480_v56  ;;  %v482_v58 = vpop.f32.mrb[1].mxu0 }
 0x131   : > { %vm488_vm3 = vcmp.gt.f32.partialorder %v482_v58, 0.0  ;;  %v490_v59 = vmul.f32 0.01, %v482_v58  ;;  %v484_v60 = vpop.f32.mrb[2].mxu0 }
 0x132   : > { %v491_v61 = vsel %vm487_vm2, %v480_v56, %v489_v57  ;;  %v485_v62 = vpop.f32.mrb[3].mxu0 }
 0x133   : > { %v492_v63 = vsel %vm488_vm3, %v482_v58, %v490_v59 }
 0x134   : > { %v607_v0 = vpack.c.bf16 %v492_v63, %v491_v61 }
 0x136   : > { %501 = vst [vmem:[%s275_s5] sm:$0xff] %v607_v0 }
 0x137 PF: > { %p9_p9 = scmp.ge.s32.totalorder %s730_s13, 4   ;;  %s852_s9 = smov %s692_s10 }
 0x138   : > { %s853_s10 = smov %s739_s16  ;;  %s854_s11 = smov %s730_s13 }
 0x139   :  { %11 = sbr.rel (!%p9_p9) target bundleno = 2 (0x2), region = 101 }

// kernel: affine_param_block_forward.3
= control target key start
LH: loop header
LB: loop body
LE: loop exit
PB: predicated region body
PF: predicated region fallthrough
CT: control target
= control target key end

     0   :  { %s1053_s9 = smov 0   ;;  %s1055_s10 = smov 0   ;;  %s1276_s0 = inlined_call_operand.vmem [shape: bf16[8,392], index: 0, kind: input, shape index: {}]   ;;  %s1277_s1 = inlined_call_operand.vmem [shape: bf16[392,512], index: 1, kind: input, shape index: {}]   ;;  %s1278_s2 = inlined_call_operand.vmem [shape: f32[8,512], index: 2, kind: output, shape index: {}]  }
   0x1   :  { %s1057_s11 = smov 0  }
   0x2 LB: > { %s840_s12 = sadd.s32 4294967295, %s1036_s11   ;;  %s1070_s13 = sadd.s32 1, %s1036_s11   ;;  %s1036_s11 = sphi %s1057_s11, %s1281_s11   ;;  %s1032_s10 = sphi %s1055_s10, %s1280_s10   ;;  %s1028_s9 = sphi %s1053_s9, %s1279_s9  }
   0x3   : > { %s37_s14 = ssub.s32 %s1036_s11, %s1070_s13  ;;  %s40_s15 = sadd.s32 1, %s1032_s10 }
   0x4   : > { %p38_p0 = scmp.eq.s32.totalorder %s37_s14, 0  ;;  %p47_p1 = scmp.ne.s32.totalorder %s1032_s10, %s1028_s9 }
   0x5   : > { %p48_p2 = scmp.eq.s32.totalorder %s1036_s11, 0  ;;  %p843_p4 = scmp.ge.s32.totalorder %s1036_s11, 2 }
   0x6   : > { %s1079_s16 = scalar_select %p38_p0, %s1032_s10, %s40_s15  }
   0x7   : > { %p49_p3 = por %p48_p2, %p47_p1  ;;  %102 = sbr.rel (%p843_p4) target bundleno = 43 (0x2b), region = 20 }
   0xe   : > { %105 = sbr.rel (!%p49_p3) target bundleno = 43 (0x2b), region = 24  ;;  %s107_s17 = sand.u32 (%p49_p3), 1, %s1032_s10  }
   0xf   : > { %s907_s18 = sshll.u32 (%p49_p3), %s1036_s11, 3  ;;  %s910_s19 = smul.u32 (%p49_p3), 392, %s107_s17 }
  0x10   : > { %s1087_s22 = scalar_lea.vmem (%p49_p3), %s1277_s1, %s907_s18 }
  0x11   : > { %v236_v0 = vld [vmem:[%s1087_s22] sm:$0xff] (%p49_p3)  ;;  %v238_v1 = vld [vmem:[%s1087_s22 + $0x10] sm:$0xff] (%p49_p3)  ;;  %s1095_s23 = scalar_lea.vmem (%p49_p3), [#allocation2], %s910_s19 }
  0x12   : > { %v240_v2 = vld [vmem:[%s1087_s22 + $0x20] sm:$0xff] (%p49_p3)  ;;  %v242_v3 = vld [vmem:[%s1087_s22 + $0x30] sm:$0xff] (%p49_p3)  ;;  %237 = vst [vmem:[%s1095_s23] sm:$0xff] (%p49_p3), %v236_v0  ;;  %239 = vst [vmem:[%s1095_s23 + $0x8] sm:$0xff] (%p49_p3), %v238_v1 }
  0x13   : > { %v244_v4 = vld [vmem:[%s1087_s22 + $0x40] sm:$0xff] (%p49_p3)  ;;  %v246_v5 = vld [vmem:[%s1087_s22 + $0x50] sm:$0xff] (%p49_p3)  ;;  %241 = vst [vmem:[%s1095_s23 + $0x10] sm:$0xff] (%p49_p3), %v240_v2  ;;  %243 = vst [vmem:[%s1095_s23 + $0x18] sm:$0xff] (%p49_p3), %v242_v3 }
  0x14   : > { %245 = vst [vmem:[%s1095_s23 + $0x20] sm:$0xff] (%p49_p3), %v244_v4  ;;  %247 = vst [vmem:[%s1095_s23 + $0x28] sm:$0xff] (%p49_p3), %v246_v5  ;;  %v248_v6 = vld [vmem:[%s1087_s22 + $0x60] sm:$0xff] (%p49_p3)  ;;  %v250_v7 = vld [vmem:[%s1087_s22 + $0x70] sm:$0xff] (%p49_p3) }
  0x15   : > { %v252_v8 = vld [vmem:[%s1087_s22 + $0x80] sm:$0xff]  ;;  %249 = vst [vmem:[%s1095_s23 + $0x30] sm:$0xff] %v248_v6  ;;  %251 = vst [vmem:[%s1095_s23 + $0x38] sm:$0xff] %v250_v7  ;;  %v254_v9 = vld [vmem:[%s1087_s22 + $0x90] sm:$0xff] }
  0x16   : > { %253 = vst [vmem:[%s1095_s23 + $0x40] sm:$0xff] %v252_v8  ;;  %v256_v10 = vld [vmem:[%s1087_s22 + $0xa0] sm:$0xff]  ;;  %v258_v11 = vld [vmem:[%s1087_s22 + $0xb0] sm:$0xff]  ;;  %255 = vst [vmem:[%s1095_s23 + $0x48] sm:$0xff] %v254_v9 }
  0x17   : > { %257 = vst [vmem:[%s1095_s23 + $0x50] sm:$0xff] %v256_v10  ;;  %259 = vst [vmem:[%s1095_s23 + $0x58] sm:$0xff] %v258_v11  ;;  %v260_v12 = vld [vmem:[%s1087_s22 + $0xc0] sm:$0xff]  ;;  %v262_v13 = vld [vmem:[%s1087_s22 + $0xd0] sm:$0xff] }
  0x18   : > { %v264_v14 = vld [vmem:[%s1087_s22 + $0xe0] sm:$0xff]  ;;  %261 = vst [vmem:[%s1095_s23 + $0x60] sm:$0xff] %v260_v12  ;;  %263 = vst [vmem:[%s1095_s23 + $0x68] sm:$0xff] %v262_v13  ;;  %v266_v15 = vld [vmem:[%s1087_s22 + $0xf0] sm:$0xff] }
  0x19   : > { %265 = vst [vmem:[%s1095_s23 + $0x70] sm:$0xff] %v264_v14  ;;  %v268_v16 = vld [vmem:[%s1087_s22 + $0x100] sm:$0xff]  ;;  %v270_v17 = vld [vmem:[%s1087_s22 + $0x110] sm:$0xff]  ;;  %267 = vst [vmem:[%s1095_s23 + $0x78] sm:$0xff] %v266_v15 }
  0x1a   : > { %269 = vst [vmem:[%s1095_s23 + $0x80] sm:$0xff] %v268_v16  ;;  %271 = vst [vmem:[%s1095_s23 + $0x88] sm:$0xff] %v270_v17  ;;  %v272_v18 = vld [vmem:[%s1087_s22 + $0x120] sm:$0xff]  ;;  %v274_v19 = vld [vmem:[%s1087_s22 + $0x130] sm:$0xff] }
  0x1b   : > { %v276_v20 = vld [vmem:[%s1087_s22 + $0x140] sm:$0xff]  ;;  %273 = vst [vmem:[%s1095_s23 + $0x90] sm:$0xff] %v272_v18  ;;  %275 = vst [vmem:[%s1095_s23 + $0x98] sm:$0xff] %v274_v19  ;;  %v278_v21 = vld [vmem:[%s1087_s22 + $0x150] sm:$0xff] }
  0x1c   : > { %277 = vst [vmem:[%s1095_s23 + $0xa0] sm:$0xff] %v276_v20  ;;  %v280_v22 = vld [vmem:[%s1087_s22 + $0x160] sm:$0xff]  ;;  %v282_v23 = vld [vmem:[%s1087_s22 + $0x170] sm:$0xff]  ;;  %279 = vst [vmem:[%s1095_s23 + $0xa8] sm:$0xff] %v278_v21 }
  0x1d   : > { %281 = vst [vmem:[%s1095_s23 + $0xb0] sm:$0xff] %v280_v22  ;;  %283 = vst [vmem:[%s1095_s23 + $0xb8] sm:$0xff] %v282_v23  ;;  %v284_v24 = vld [vmem:[%s1087_s22 + $0x180] sm:$0xff]  ;;  %v286_v25 = vld [vmem:[%s1087_s22 + $0x190] sm:$0xff] }
  0x1e   : > { %v288_v26 = vld [vmem:[%s1087_s22 + $0x1a0] sm:$0xff]  ;;  %285 = vst [vmem:[%s1095_s23 + $0xc0] sm:$0xff] %v284_v24  ;;  %287 = vst [vmem:[%s1095_s23 + $0xc8] sm:$0xff] %v286_v25  ;;  %v290_v27 = vld [vmem:[%s1087_s22 + $0x1b0] sm:$0xff] }
  0x1f   : > { %289 = vst [vmem:[%s1095_s23 + $0xd0] sm:$0xff] %v288_v26  ;;  %v292_v28 = vld [vmem:[%s1087_s22 + $0x1c0] sm:$0xff]  ;;  %v294_v29 = vld [vmem:[%s1087_s22 + $0x1d0] sm:$0xff]  ;;  %291 = vst [vmem:[%s1095_s23 + $0xd8] sm:$0xff] %v290_v27 }
  0x20   : > { %293 = vst [vmem:[%s1095_s23 + $0xe0] sm:$0xff] %v292_v28  ;;  %295 = vst [vmem:[%s1095_s23 + $0xe8] sm:$0xff] %v294_v29  ;;  %v296_v30 = vld [vmem:[%s1087_s22 + $0x1e0] sm:$0xff]  ;;  %v298_v31 = vld [vmem:[%s1087_s22 + $0x1f0] sm:$0xff] }
  0x21   : > { %v300_v32 = vld [vmem:[%s1087_s22 + $0x200] sm:$0xff]  ;;  %297 = vst [vmem:[%s1095_s23 + $0xf0] sm:$0xff] %v296_v30  ;;  %299 = vst [vmem:[%s1095_s23 + $0xf8] sm:$0xff] %v298_v31  ;;  %v302_v33 = vld [vmem:[%s1087_s22 + $0x210] sm:$0xff] }
  0x22   : > { %301 = vst [vmem:[%s1095_s23 + $0x100] sm:$0xff] %v300_v32  ;;  %v304_v34 = vld [vmem:[%s1087_s22 + $0x220] sm:$0xff]  ;;  %v306_v35 = vld [vmem:[%s1087_s22 + $0x230] sm:$0xff]  ;;  %303 = vst [vmem:[%s1095_s23 + $0x108] sm:$0xff] %v302_v33 }
  0x23   : > { %305 = vst [vmem:[%s1095_s23 + $0x110] sm:$0xff] %v304_v34  ;;  %307 = vst [vmem:[%s1095_s23 + $0x118] sm:$0xff] %v306_v35  ;;  %v308_v36 = vld [vmem:[%s1087_s22 + $0x240] sm:$0xff]  ;;  %v310_v37 = vld [vmem:[%s1087_s22 + $0x250] sm:$0xff] }
  0x24   : > { %v312_v38 = vld [vmem:[%s1087_s22 + $0x260] sm:$0xff]  ;;  %309 = vst [vmem:[%s1095_s23 + $0x120] sm:$0xff] %v308_v36  ;;  %311 = vst [vmem:[%s1095_s23 + $0x128] sm:$0xff] %v310_v37  ;;  %v314_v39 = vld [vmem:[%s1087_s22 + $0x270] sm:$0xff] }
  0x25   : > { %313 = vst [vmem:[%s1095_s23 + $0x130] sm:$0xff] %v312_v38  ;;  %v316_v40 = vld [vmem:[%s1087_s22 + $0x280] sm:$0xff]  ;;  %v318_v41 = vld [vmem:[%s1087_s22 + $0x290] sm:$0xff]  ;;  %315 = vst [vmem:[%s1095_s23 + $0x138] sm:$0xff] %v314_v39 }
  0x26   : > { %317 = vst [vmem:[%s1095_s23 + $0x140] sm:$0xff] %v316_v40  ;;  %319 = vst [vmem:[%s1095_s23 + $0x148] sm:$0xff] %v318_v41  ;;  %v320_v42 = vld [vmem:[%s1087_s22 + $0x2a0] sm:$0xff]  ;;  %v322_v43 = vld [vmem:[%s1087_s22 + $0x2b0] sm:$0xff] }
  0x27   : > { %v324_v44 = vld [vmem:[%s1087_s22 + $0x2c0] sm:$0xff]  ;;  %321 = vst [vmem:[%s1095_s23 + $0x150] sm:$0xff] %v320_v42  ;;  %323 = vst [vmem:[%s1095_s23 + $0x158] sm:$0xff] %v322_v43  ;;  %v326_v45 = vld [vmem:[%s1087_s22 + $0x2d0] sm:$0xff] }
  0x28   : > { %325 = vst [vmem:[%s1095_s23 + $0x160] sm:$0xff] %v324_v44  ;;  %v328_v46 = vld [vmem:[%s1087_s22 + $0x2e0] sm:$0xff]  ;;  %v330_v47 = vld [vmem:[%s1087_s22 + $0x2f0] sm:$0xff]  ;;  %327 = vst [vmem:[%s1095_s23 + $0x168] sm:$0xff] %v326_v45 }
  0x29   : > { %329 = vst [vmem:[%s1095_s23 + $0x170] sm:$0xff] %v328_v46  ;;  %331 = vst [vmem:[%s1095_s23 + $0x178] sm:$0xff] %v330_v47  ;;  %v332_v48 = vld [vmem:[%s1087_s22 + $0x300] sm:$0xff] }
  0x2a   : > { %333 = vst [vmem:[%s1095_s23 + $0x180] sm:$0xff] %v332_v48 }
  0x2b PF: > { %p846_p5 = scmp.ge.s32.totalorder %s1036_s11, 1  ;;  %p338_p6 = scmp.lt.s32.totalorder %s1036_s11, 3 }
  0x2d   : > { %p339_p7 = pnand %p846_p5, %p338_p6 }
  0x2e   : > { %s345_s24 = sand.u32 (!%p339_p7), 1, %s1028_s9   ;;  %v1195_v49 = vld [vmem:[%s1276_s0 + $0x8] sm:$0xff] (!%p339_p7)  ;;  %vm683_vm0 = vcmask (!%p339_p7), 64512   ;;  %v1200_v50 = vld [vmem:[%s1276_s0] sm:$0xff] (!%p339_p7)  ;;  %vm687_vm1 = vcmask (!%p339_p7), 1043456   ;;  %s847_s3 = sshll.u32 (!%p339_p7), %s840_s12, 1 }
  0x2f   : > { %342 = sbr.rel (%p339_p7) target bundleno = 332 (0x14c), region = 62  ;;  %v852_v51 = vcombine.high (!%p339_p7), %v1195_v49, %v1195_v49  ;;  %v850_v52 = vcombine.high (!%p339_p7), %v1200_v50, %v1200_v50  ;;  %v851_v34 = vcombine.low (!%p339_p7), %v1195_v49, %v1195_v49  ;;  %v849_v42 = vcombine.low (!%p339_p7), %v1200_v50, %v1200_v50  ;;  %p368_p8 = scmp.lt.s32.totalorder (!%p339_p7), %s847_s3, 3 }
  0x30   : > { %s911_s29 = smul.u32 (!%p339_p7), 392, %s345_s24 }
  0x31   : > { %904 = vmatprep.mubr.msk.bf16.mxu0 (!%p339_p7), %vm683_vm0, %v852_v51  ;;  %726 = vmatprep.mubr.bf16.mxu1 (!%p339_p7), %v850_v52 }
  0x32   : > { %s1206_s30 = scalar_lea.vmem (!%p339_p7), [#allocation2], %s911_s29 }
  0x33   : > { %v936_v53 = vld [vmem:[%s1206_s30 + $0x4] ss:$8 sps:$4 sm:$0xff] (!%p339_p7)   ;;  %v938_v54 = vld [vmem:[%s1206_s30] ss:$8 sps:$4 sm:$0xff] (!%p339_p7)   ;;  %v939_v55 = vld [vmem:[%s1206_s30 + $0x14] ss:$8 sps:$4 sm:$0xff] (!%p339_p7)  }
  0x34   : > { %694 = vmatprep.subr.bf16.mxu1 (!%p339_p7), %v936_v53  ;;  %v941_v56 = vld [vmem:[%s1206_s30 + $0x10] ss:$8 sps:$4 sm:$0xff] (!%p339_p7)   ;;  %v942_v57 = vld [vmem:[%s1206_s30 + $0x24] ss:$8 sps:$4 sm:$0xff] (!%p339_p7)   ;;  %v944_v58 = vld [vmem:[%s1206_s30 + $0x20] ss:$8 sps:$4 sm:$0xff] (!%p339_p7)  }
  0x35   : > { %695 = vmatpush1.bf16.msra.mxu1 (!%p339_p7), %v938_v54  ;;  %v945_v59 = vld [vmem:[%s1206_s30 + $0x34] ss:$8 sps:$4 sm:$0xff] (!%p339_p7)   ;;  %v957_v60 = vld [vmem:[%s1206_s30 + $0x104] ss:$8 sps:$4 sm:$0xff] (!%p339_p7)   ;;  %v959_v61 = vld [vmem:[%s1206_s30 + $0x100] ss:$8 sps:$4 sm:$0xff] (!%p339_p7)  }
  0x36   : > { %696 = vmatprep.subr.bf16.mxu1 %v939_v55  ;;  %v947_v62 = vld [vmem:[%s1206_s30 + $0x30] ss:$8 sps:$4 sm:$0xff]   ;;  %v948_v63 = vld [vmem:[%s1206_s30 + $0x44] ss:$8 sps:$4 sm:$0xff]   ;;  %735 = vmatprep.subr.bf16.mxu0 %v957_v60  ;;  %v963_v0 = vld [vmem:[%s1206_s30 + $0x114] ss:$8 sps:$4 sm:$0xff]  }
  0x37   : > { %736 = vmatpush1.bf16.msra.mxu0 %v959_v61  ;;  %v965_v1 = vld [vmem:[%s1206_s30 + $0x110] ss:$8 sps:$4 sm:$0xff]   ;;  %v950_v2 = vld [vmem:[%s1206_s30 + $0x40] ss:$8 sps:$4 sm:$0xff]   ;;  %v969_v3 = vld [vmem:[%s1206_s30 + $0x124] ss:$8 sps:$4 sm:$0xff]  }
  0x38   : > { %737 = vmatprep.subr.bf16.mxu0 %v963_v0  ;;  %v951_v4 = vld [vmem:[%s1206_s30 + $0x54] ss:$8 sps:$4 sm:$0xff]   ;;  %v971_v5 = vld [vmem:[%s1206_s30 + $0x120] ss:$8 sps:$4 sm:$0xff]   ;;  %v953_v7 = vld [vmem:[%s1206_s30 + $0x50] ss:$8 sps:$4 sm:$0xff]  }
  0x39   : > { %697 = vmatpush1.bf16.msra.mxu1 %v941_v56  ;;  %v975_v6 = vld [vmem:[%s1206_s30 + $0x134] ss:$8 sps:$4 sm:$0xff]   ;;  %v954_v8 = vld [vmem:[%s1206_s30 + $0x64] ss:$8 sps:$4 sm:$0xff]   ;;  %v977_v9 = vld [vmem:[%s1206_s30 + $0x130] ss:$8 sps:$4 sm:$0xff]  }
  0x3a   : > { %698 = vmatprep.subr.bf16.mxu1 %v942_v57  ;;  %v981_v10 = vld [vmem:[%s1206_s30 + $0x144] ss:$8 sps:$4 sm:$0xff]   ;;  %v956_v11 = vld [vmem:[%s1206_s30 + $0x60] ss:$8 sps:$4 sm:$0xff]   ;;  %v960_v12 = vld [vmem:[%s1206_s30 + $0x74] ss:$8 sps:$4 sm:$0xff]  }
  0x3b   : > { %738 = vmatpush1.bf16.msra.mxu0 %v965_v1  ;;  %v983_v13 = vld [vmem:[%s1206_s30 + $0x140] ss:$8 sps:$4 sm:$0xff]   ;;  %v987_v14 = vld [vmem:[%s1206_s30 + $0x154] ss:$8 sps:$4 sm:$0xff]   ;;  %v962_v15 = vld [vmem:[%s1206_s30 + $0x70] ss:$8 sps:$4 sm:$0xff]  }
  0x3c   : > { %739 = vmatprep.subr.bf16.mxu0 %v969_v3  ;;  %v966_v16 = vld [vmem:[%s1206_s30 + $0x84] ss:$8 sps:$4 sm:$0xff]   ;;  %v989_v17 = vld [vmem:[%s1206_s30 + $0x150] ss:$8 sps:$4 sm:$0xff]   ;;  %v968_v19 = vld [vmem:[%s1206_s30 + $0x80] ss:$8 sps:$4 sm:$0xff]  }
  0x3d   : > { %699 = vmatpush1.bf16.msra.mxu1 %v944_v58  ;;  %v993_v18 = vld [vmem:[%s1206_s30 + $0x164] ss:$8 sps:$4 sm:$0xff]   ;;  %v972_v20 = vld [vmem:[%s1206_s30 + $0x94] ss:$8 sps:$4 sm:$0xff]   ;;  %v995_v21 = vld [vmem:[%s1206_s30 + $0x160] ss:$8 sps:$4 sm:$0xff]  }
  0x3e   : > { %700 = vmatprep.subr.bf16.mxu1 %v945_v59  ;;  %v999_v22 = vld [vmem:[%s1206_s30 + $0x174] ss:$8 sps:$4 sm:$0xff]   ;;  %v974_v23 = vld [vmem:[%s1206_s30 + $0x90] ss:$8 sps:$4 sm:$0xff]   ;;  %v424_v24 = vld [vmem:[%s1206_s30 + $0x180] sm:$0xff]  ;;  %s1283_s3 = smov (!%p368_p8, %s847_s3), 3 }
  0x3f   : > { %740 = vmatpush1.bf16.msra.mxu0 %v971_v5  ;;  %v978_v25 = vld [vmem:[%s1206_s30 + $0xa4] ss:$8 sps:$4 sm:$0xff]   ;;  %v1001_v26 = vld [vmem:[%s1206_s30 + $0x170] ss:$8 sps:$4 sm:$0xff]   ;;  %v902_v27 = vcombine.high %v424_v24, %v424_v24  ;;  %v901_v28 = vcombine.low %v424_v24, %v424_v24  ;;  %v980_v29 = vld [vmem:[%s1206_s30 + $0xa0] ss:$8 sps:$4 sm:$0xff]  }
  0x40   : > { %741 = vmatprep.subr.bf16.mxu0 %v975_v6  ;;  %v984_v30 = vld [vmem:[%s1206_s30 + $0xb4] ss:$8 sps:$4 sm:$0xff]   ;;  %v986_v32 = vld [vmem:[%s1206_s30 + $0xb0] ss:$8 sps:$4 sm:$0xff]   ;;  %v990_v33 = vld [vmem:[%s1206_s30 + $0xc4] ss:$8 sps:$4 sm:$0xff]  }
  0x41   : > { %701 = vmatpush1.bf16.msra.mxu1 %v947_v62  ;;  %v689_v31 = vsel %vm687_vm1, %v901_v28, 0  ;;  %v992_v35 = vld [vmem:[%s1206_s30 + $0xc0] ss:$8 sps:$4 sm:$0xff]   ;;  %v996_v36 = vld [vmem:[%s1206_s30 + $0xd4] ss:$8 sps:$4 sm:$0xff]   ;;  %s848_s4 = sshll.u32 %s1283_s3, 3 }
  0x42   : > { %702 = vmatprep.subr.bf16.mxu1 %v948_v63  ;;  %v998_v37 = vld [vmem:[%s1206_s30 + $0xd0] ss:$8 sps:$4 sm:$0xff]   ;;  %v1002_v38 = vld [vmem:[%s1206_s30 + $0xe4] ss:$8 sps:$4 sm:$0xff]   ;;  %v1004_v39 = vld [vmem:[%s1206_s30 + $0xe0] ss:$8 sps:$4 sm:$0xff]   ;;  %s371_s7 = scalar_lea.vmem %s1278_s2, %s848_s4 }
  0x43   : > { %742 = vmatpush1.bf16.msra.mxu0 %v977_v9  ;;  %v1007_v40 = vld [vmem:[%s1206_s30 + $0xf4] ss:$8 sps:$4 sm:$0xff]   ;;  %v1011_v41 = vld [vmem:[%s1206_s30 + $0xf0] ss:$8 sps:$4 sm:$0xff]  }
  0x44   : > { %743 = vmatprep.subr.bf16.mxu0 %v981_v10 }
  0x45   : > { %703 = vmatpush1.bf16.msra.mxu1 %v950_v2 }
  0x46   : > { %704 = vmatprep.subr.bf16.mxu1 %v951_v4 }
  0x47   : > { %744 = vmatpush1.bf16.msra.mxu0 %v983_v13 }
  0x48   : > { %745 = vmatprep.subr.bf16.mxu0 %v987_v14 }
  0x49   : > { %705 = vmatpush1.bf16.msra.mxu1 %v953_v7 }
  0x4a   : > { %706 = vmatprep.subr.bf16.mxu1 %v954_v8 }
  0x4b   : > { %746 = vmatpush1.bf16.msra.mxu0 %v989_v17 }
  0x4c   : > { %747 = vmatprep.subr.bf16.mxu0 %v993_v18 }
  0x4d   : > { %707 = vmatpush1.bf16.msra.mxu1 %v956_v11 }
  0x4e   : > { %708 = vmatprep.subr.bf16.mxu1 %v960_v12 }
  0x4f   : > { %748 = vmatpush1.bf16.msra.mxu0 %v995_v21 }
  0x50   : > { %749 = vmatprep.subr.bf16.mxu0 %v999_v22 }
  0x51   : > { %709 = vmatpush1.bf16.msra.mxu1 %v962_v15 }
  0x52   : > { %710 = vmatprep.subr.bf16.mxu1 %v966_v16 }
  0x53   : > { %750 = vmatpush1.bf16.msra.mxu0 %v1001_v26 }
  0x54   : > { %903 = vmatprep.subr.msk.bf16.mxu0 %vm687_vm1, %v902_v27 }
  0x55   : > { %711 = vmatpush1.bf16.msra.mxu1 %v968_v19 }
  0x56   : > { %712 = vmatprep.subr.bf16.mxu1 %v972_v20 }
  0x57   : > { %752 = vmatpush1.bf16.msra.mxu0 %v689_v31 }
  0x59   : > { %713 = vmatpush1.bf16.msra.mxu1 %v974_v23 }
  0x5a   : > { %714 = vmatprep.subr.bf16.mxu1 %v978_v25  ;;  %768 = vmatmul.mubr.bf16.vlgmr.msra.gmra.mrb[0].mxu0 %v851_v34 }
  0x5d   : > { %715 = vmatpush1.bf16.msra.mxu1 %v980_v29 }
  0x5e   : > { %716 = vmatprep.subr.bf16.mxu1 %v984_v30 }
  0x61   : > { %717 = vmatpush1.bf16.msra.mxu1 %v986_v32 }
  0x62   : > { %718 = vmatprep.subr.bf16.mxu1 %v990_v33 }
  0x65   : > { %719 = vmatpush1.bf16.msra.mxu1 %v992_v35 }
  0x66   : > { %720 = vmatprep.subr.bf16.mxu1 %v996_v36 }
  0x69   : > { %721 = vmatpush1.bf16.msra.mxu1 %v998_v37 }
  0x6a   : > { %722 = vmatprep.subr.bf16.mxu1 %v1002_v38 }
  0x6d   : > { %723 = vmatpush1.bf16.msra.mxu1 %v1004_v39 }
  0x6e   : > { %724 = vmatprep.subr.bf16.mxu1 %v1007_v40 }
  0x71   : > { %725 = vmatpush1.bf16.msra.mxu1 %v1011_v41 }
  0x74   : > { %727 = vmatmul.mubr.bf16.vlgmr.msra.gmra.mrb[0].mxu1 %v849_v42 }
 0x12d   : > { %v769_v43 = vpop.f32.mrb[0].mxu0 }
 0x12e   : > { %v771_v44 = vpop.f32.mrb[1].mxu0 }
 0x12f   : > { %v773_v45 = vpop.f32.mrb[2].mxu0 }
 0x130   : > { %v774_v46 = vpop.f32.mrb[3].mxu0 }
 0x147   : > { %v728_v47 = vpop.f32.mrb[0].mxu1 }
 0x148   : > { %v770_v48 = vadd.f32 %v769_v43, %v728_v47  ;;  %v730_v49 = vpop.f32.mrb[1].mxu1 }
 0x149   : > { %v772_v51 = vadd.f32 %v771_v44, %v730_v49  ;;  %v732_v50 = vpop.f32.mrb[2].mxu1 }
 0x14a   : > { %776 = vst [vmem:[%s371_s7] sm:$0xff] %v770_v48  ;;  %v733_v52 = vpop.f32.mrb[3].mxu1 }
 0x14b   : > { %777 = vst [vmem:[%s371_s7 + $0x8] sm:$0xff] %v772_v51 }
 0x14c PF: > { %p9_p9 = scmp.ge.s32.totalorder %s1070_s13, 4   ;;  %s1279_s9 = smov %s1032_s10 }
 0x14d   : > { %s1280_s10 = smov %s1079_s16  ;;  %s1281_s11 = smov %s1070_s13 }
 0x14e   :  { %11 = sbr.rel (!%p9_p9) target bundleno = 2 (0x2), region = 101 }

</bundles_post_ra>
